<compile_context>
chip_gen: v6e
topology: v6e:2x2x1
jax: 0.10.0
libtpu: 0.0.40
codegen_flags: <defaults>
</compile_context>

<pallas_src>
import math

import jax
import jax.numpy as jnp
from jax.experimental import pallas as pl
from jax.experimental.pallas import tpu as pltpu


def _identity_kernel(x_ref, o_ref):
    # Pure pass-through: the reference forward has no ops.
    o_ref[...] = x_ref[...]


def _lane_dense_view(x: jax.Array):
    """Reshape x to a lane-dense 2D slab (rows, 128) when possible.

    Falls back to (prod(leading), last_dim) if total size is not a multiple
    of 128 (the whole-array block then still satisfies the tiling rule).
    """
    total = math.prod(x.shape)
    if total % 128 == 0:
        return x.reshape(total // 128, 128)
    return x.reshape(math.prod(x.shape[:-1]), x.shape[-1])


def net_forward(x: jax.Array) -> jax.Array:
    """Pallas equivalent of Net.forward (a no-op): returns x unchanged."""
    orig_shape = x.shape
    x2d = _lane_dense_view(x)
    rows, lanes = x2d.shape

    # Row tile: multiple of 8 (sublane rule), capped so one block stays small
    # relative to VMEM even with double-buffered input + aliased output
    # (v7x: 64 MiB physical / 32 MiB scoped).  1024 rows x 128 lanes x 4 B
    # = 512 KiB per buffer -> ~2 MiB total with double buffering.
    if rows % 8 == 0:
        tile_rows = min(rows, 1024)
        # keep the tile a multiple of 8 (cap 1024 already is)
        tile_rows = max(8, (tile_rows // 8) * 8)
    else:
        tile_rows = rows  # full extent satisfies the tiling rule

    grid = (pl.cdiv(rows, tile_rows),)

    out2d = pl.pallas_call(
        _identity_kernel,
        out_shape=jax.ShapeDtypeStruct(x2d.shape, x2d.dtype),
        grid=grid,
        in_specs=[pl.BlockSpec((tile_rows, lanes), lambda i: (i, 0))],
        out_specs=pl.BlockSpec((tile_rows, lanes), lambda i: (i, 0)),
        # Alias output to input: no extra HBM footprint for a no-op forward.
        input_output_aliases={0: 0},
        compiler_params=pltpu.CompilerParams(
            dimension_semantics=("parallel",),
        ),
    )(x2d)

    return out2d.reshape(orig_shape)


if __name__ == "__main__":
    key = jax.random.PRNGKey(0)
    in_channels = 4
    num_classes = 10  # unused: reference __init__ defines no layers
    B, H, W = 2, 16, 16

    x = jax.random.normal(key, (B, in_channels, H, W), dtype=jnp.float32)

    y = net_forward(x)
    jax.block_until_ready(y)

    # Sanity check: identity semantics (the only well-defined behavior).
    assert y.shape == x.shape
    assert bool(jnp.allclose(y, x))

    print("KERNEL_OK")
</pallas_src>

<mosaic_0001>
module attributes {stable_mosaic.version = 11 : i64} {
  func.func @_identity_kernel(%arg0: i32, %arg1: memref<16x128xf32, #tpu.memory_space<vmem>>, %arg2: memref<16x128xf32, #tpu.memory_space<vmem>>) attributes {dimension_semantics = [#tpu.dimension_semantics<parallel>], iteration_bounds = array<i64: 1>, scalar_prefetch = 0 : i64, scratch_operands = 0 : i64, tpu.core_type = #tpu.core_type<tc>, window_params = [{transform_indices = @transform_0, window_bounds = array<i64: 16, 128>}, {transform_indices = @transform_1, window_bounds = array<i64: 16, 128>}]} {
    %c0 = arith.constant 0 : index
    %c0_0 = arith.constant 0 : index
    %0 = vector.load %arg1[%c0, %c0_0] : memref<16x128xf32, #tpu.memory_space<vmem>>, vector<16x128xf32>
    %c0_1 = arith.constant 0 : index
    %c0_2 = arith.constant 0 : index
    %1 = vector.load %arg2[%c0_1, %c0_2] : memref<16x128xf32, #tpu.memory_space<vmem>>, vector<16x128xf32>
    tpu.vector_store %arg2[%c0_1, %c0_2], %0 {strides = array<i32>} : memref<16x128xf32, #tpu.memory_space<vmem>>, vector<16x128xf32>,
    return
  }
  func.func @transform_0(%arg0: i32) -> (i32, i32) {
    %c0_i32 = arith.constant 0 : i32
    %c0_i32_0 = arith.constant 0 : i32
    return %arg0, %c0_i32 : i32, i32
  }
  func.func @transform_1(%arg0: i32) -> (i32, i32) {
    %c0_i32 = arith.constant 0 : i32
    %c0_i32_0 = arith.constant 0 : i32
    return %arg0, %c0_i32 : i32, i32
  }
}

</mosaic_0001>

<bundles_post_ra>
// kernel: tpu_custom_call.1
= control target key start
LH: loop header
LB: loop body
LE: loop exit
PB: predicated region body
PF: predicated region fallthrough
CT: control target
= control target key end

     0   :  { %6 = vsyncpa [#allocation3], 0  ;;  %s112_s0 = inlined_call_operand.hbm [shape: f32[16,128], index: 0, kind: input, shape index: {}, may-alias: {0,1}]   ;;  %s113_s1 = inlined_call_operand.hbm [shape: f32[16,128], index: 1, kind: output, shape index: {}, may-alias: {0,1}]  }
   0x1   :  { %7 = vsyncpa [#allocation4], 0  ;;  %s92_s6 = smov [#allocation2]  }
   0x2   :  { %s13_s7 = sshll.u32 %s92_s6, 4  ;;  %s14_s7 = int_to_ptr.vmem [resolvable:$true] %s13_s7 }
   0x3   :  { %s56_s8 = scalar_lea.vmem %s14_s7, 256  ;;  %p61_p1 = scmp.lt.s32.totalorder %s14_s7, %s14_s7 }
   0x4   :  { %p57_p0 = scmp.ne.s32.totalorder %s14_s7, %s56_s8  ;;  %p62_p2 = scmp.lt.s32.totalorder %s56_s8, %s56_s8 }
   0x6   :  { %p63_p3 = por %p62_p2, %p61_p1 }
   0x8   :  { %p64_p4 = pnand %p63_p3, %p57_p0 }
   0xa   :  { %67 = shalt.err (!%p64_p4)
}
   0xb   :  { %s93_s9 = smov 128   ;;  %s94_s10 = smov 8  }
   0xc   :  { %19 = dma.hbm_to_vmem [thread:$0]  %s112_s0, 256, %s14_s7, [#allocation3], %s93_s9, %s93_s9, %s94_s10  }
   0xd   :  { %88 = dma.done.wait [#allocation3], 256  }
   0xe   :  { %89 = vsyncadd [#allocation3], 4294967040  ;;  %s95_s13 = smov [#allocation5]   ;;  %v23_v0 = vld [vmem:[#allocation2] sm:$0xff]  ;;  %v24_v1 = vld [vmem:[#allocation2 + $0x8] sm:$0xff] }
   0xf   :  { %s32_s14 = sshll.u32 %s95_s13, 4  ;;  %25 = vst [vmem:[#allocation5] sm:$0xff] %v23_v0  ;;  %26 = vst [vmem:[#allocation5 + $0x8] sm:$0xff] %v24_v1  ;;  %s33_s14 = int_to_ptr.vmem [resolvable:$true] %s32_s14 }
  0x10   :  { %s68_s15 = scalar_lea.vmem %s33_s14, 256  ;;  %p73_p6 = scmp.lt.s32.totalorder %s33_s14, %s33_s14 }
  0x11   :  { %p69_p5 = scmp.ne.s32.totalorder %s33_s14, %s68_s15  ;;  %p74_p7 = scmp.lt.s32.totalorder %s68_s15, %s68_s15 }
  0x13   :  { %p75_p8 = por %p74_p7, %p73_p6 }
  0x15   :  { %p76_p9 = pnand %p75_p8, %p69_p5 }
  0x17   :  { %79 = shalt.err (!%p76_p9)
}
  0x18   :  { %38 = dma.vmem_to_hbm [thread:$0]  %s33_s14, 256, %s113_s1, [#allocation4], %s93_s9, %s93_s9, %s94_s10  }
  0x19   :  { %90 = dma.done.wait [#allocation4], 256  }
  0x1a   :  { %91 = vsyncadd [#allocation4], 4294967040 }
  0x1b   :  { %42 = vsyncpa [#allocation3], 1 }
  0x1c   :  { %43 = vsyncpa [#allocation4], 1 }

</bundles_post_ra>
